<compile_context>
chip_gen: v5e
topology: v5e:2x2
jax: 0.10.0
libtpu: 0.0.40
codegen_flags: <defaults>
</compile_context>

<pallas_src>
import jax
import jax.numpy as jnp
from jax.experimental import pallas as pl
from jax.experimental.pallas import tpu as pltpu


def _cdiv(a, b):
    return -(-a // b)


# ---------------------------------------------------------------------------
# Kernel A: y_tile = relu(W @ x_tile)   ([C,4C] @ [4C,tile_hw] -> [C,tile_hw])
#           plus per-channel sum / sum-of-squares accumulation (per batch n),
#           needed for training-mode BatchNorm statistics.
# ---------------------------------------------------------------------------
def conv_relu_stats_kernel(x_ref, w_ref, y_ref, sum_ref, sq_ref):
    j = pl.program_id(1)  # H*W tile index (accumulator / "arbitrary" axis)

    y = jnp.dot(w_ref[...], x_ref[...],           # MXU
                preferred_element_type=jnp.float32)
    y = jnp.maximum(y, 0.0)                       # relu (VPU)
    y_ref[...] = y

    # per-batch partial stats live across the j axis only
    @pl.when(j == 0)
    def _():
        sum_ref[...] = jnp.zeros_like(sum_ref)
        sq_ref[...] = jnp.zeros_like(sq_ref)

    sum_ref[...] += jnp.sum(y, axis=1, keepdims=True)        # [C, 1]
    sq_ref[...] += jnp.sum(y * y, axis=1, keepdims=True)     # [C, 1]


# ---------------------------------------------------------------------------
# Kernel B: out = y * scale + shift   (per-channel scale/shift broadcast over
#           the lane (pixel) axis; output already in NCHW layout)
# ---------------------------------------------------------------------------
def bn_apply_kernel(y_ref, scale_ref, shift_ref, o_ref):
    o_ref[...] = y_ref[...] * scale_ref[...] + shift_ref[...]


def _choose_tile_hw(c4, c, hw, itemsize=4, budget_bytes=24 * 1024 * 1024):
    """Largest lane-multiple tile (<=2048) whose double-buffered working set fits."""
    lane = 128
    per_col = 2 * (c4 + 2 * c) * itemsize         # double-buffered x + y (+ out) columns
    max_cols = max(lane, budget_bytes // per_col)
    hw_lanes = _cdiv(hw, lane) * lane
    tile = min(2048, hw_lanes, (max_cols // lane) * lane)
    return max(lane, tile)


def conv_module_forward(x, conv_weight, gamma, beta, *, eps=1e-5):
    """x: [N, 4C, H, W] f32.  conv_weight: [C, 4C, 1, 1].  gamma/beta: [C]."""
    N, C4, H, W = x.shape
    C = conv_weight.shape[0]
    assert C4 == 4 * C

    HW = H * W
    M = N * HW                                    # true pixel count for BN stats

    tile_hw = _choose_tile_hw(C4, C, HW)
    HW_pad = _cdiv(HW, tile_hw) * tile_hw
    n_hw = HW_pad // tile_hw

    xf = x.reshape(N, C4, HW).astype(jnp.float32)
    if HW_pad != HW:
        # zero-padded pixels give relu(W@0)=0 -> contribute nothing to sum/sumsq
        xf = jnp.pad(xf, ((0, 0), (0, 0), (0, HW_pad - HW)))
    w = conv_weight.reshape(C, C4).astype(jnp.float32)

    # Explicit VMEM limit sized for the chosen tile (safe on v5e/v6e/v7x).
    vmem_need = (2 * (C4 + 2 * C) * tile_hw + C * C4 + 4 * C) * 4
    vmem_limit = int(min(56 * 2**20, max(16 * 2**20, 2 * vmem_need)))

    grid = (N, n_hw)

    y, csum, csq = pl.pallas_call(
        conv_relu_stats_kernel,
        out_shape=(
            jax.ShapeDtypeStruct((N, C, HW_pad), jnp.float32),
            jax.ShapeDtypeStruct((N, C, 1), jnp.float32),   # per-batch partial sums
            jax.ShapeDtypeStruct((N, C, 1), jnp.float32),   # per-batch partial sumsq
        ),
        grid_spec=pltpu.PrefetchScalarGridSpec(
            num_scalar_prefetch=0,
            grid=grid,
            in_specs=[
                pl.BlockSpec((None, C4, tile_hw), lambda n, j: (n, 0, j)),
                pl.BlockSpec((C, C4), lambda n, j: (0, 0)),   # invariant weight
            ],
            out_specs=[
                pl.BlockSpec((None, C, tile_hw), lambda n, j: (n, 0, j)),
                pl.BlockSpec((None, C, 1), lambda n, j: (n, 0, 0)),
                pl.BlockSpec((None, C, 1), lambda n, j: (n, 0, 0)),
            ],
        ),
        compiler_params=pltpu.CompilerParams(
            dimension_semantics=("parallel", "arbitrary"),
            vmem_limit_bytes=vmem_limit),
    )(xf, w)

    # BatchNorm training-mode statistics (tiny glue over [N, C] partials).
    total = jnp.sum(csum, axis=0)[:, 0]                         # [C]
    total_sq = jnp.sum(csq, axis=0)[:, 0]                       # [C]
    mean = total / M
    var = jnp.maximum(total_sq / M - mean * mean, 0.0)          # biased var, clamp >= 0
    scale = gamma.astype(jnp.float32) * jax.lax.rsqrt(var + eps)
    shift = beta.astype(jnp.float32) - mean * scale

    out = pl.pallas_call(
        bn_apply_kernel,
        out_shape=jax.ShapeDtypeStruct((N, C, HW_pad), jnp.float32),
        grid_spec=pltpu.PrefetchScalarGridSpec(
            num_scalar_prefetch=0,
            grid=grid,
            in_specs=[
                pl.BlockSpec((None, C, tile_hw), lambda n, j: (n, 0, j)),
                pl.BlockSpec((C, 1), lambda n, j: (0, 0)),
                pl.BlockSpec((C, 1), lambda n, j: (0, 0)),
            ],
            out_specs=pl.BlockSpec((None, C, tile_hw), lambda n, j: (n, 0, j)),
        ),
        compiler_params=pltpu.CompilerParams(
            dimension_semantics=("parallel", "parallel"),
            vmem_limit_bytes=vmem_limit),
    )(y, scale[:, None], shift[:, None])

    if HW_pad != HW:
        out = out[:, :, :HW]
    return out.reshape(N, C, H, W)                # already NCHW; reshape is a view


def _reference(x, conv_weight, gamma, beta, eps=1e-5):
    """Pure-JAX reference matching PyTorch forward (training-mode BN)."""
    N, C4, H, W = x.shape
    C = conv_weight.shape[0]
    wt = conv_weight.reshape(C, C4)
    y = jnp.einsum('nchw,oc->nohw', x, wt)        # 1x1 conv, no bias
    y = jnp.maximum(y, 0.0)                       # relu
    mean = jnp.mean(y, axis=(0, 2, 3), keepdims=True)
    var = jnp.mean((y - mean) ** 2, axis=(0, 2, 3), keepdims=True)  # biased
    yhat = (y - mean) * jax.lax.rsqrt(var + eps)
    return yhat * gamma[None, :, None, None] + beta[None, :, None, None]


if __name__ == "__main__":
    key = jax.random.PRNGKey(0)
    k_x, k_w, k_g, k_b = jax.random.split(key, 4)

    channels = 4
    N, H, W = 2, 16, 16
    x = jax.random.normal(k_x, (N, channels * 4, H, W), dtype=jnp.float32)

    # Conv2d(channels*4, channels, 1, bias=False) weight: [C, 4C, 1, 1]
    fan_in = channels * 4
    bound = 1.0 / (fan_in ** 0.5)
    conv_weight = jax.random.uniform(
        k_w, (channels, channels * 4, 1, 1), jnp.float32, -bound, bound)

    # BatchNorm2d affine params (random deterministic values to exercise broadcast)
    gamma = 1.0 + 0.1 * jax.random.normal(k_g, (channels,), jnp.float32)
    beta = 0.1 * jax.random.normal(k_b, (channels,), jnp.float32)

    fwd = jax.jit(conv_module_forward)
    out = jax.block_until_ready(fwd(x, conv_weight, gamma, beta))

    ref = _reference(x, conv_weight, gamma, beta)
    assert out.shape == (N, channels, H, W)
    assert jnp.allclose(out, ref, atol=1e-4, rtol=1e-4), "mismatch vs reference"

    print("KERNEL_OK")
</pallas_src>

<mosaic_0001>
module attributes {stable_mosaic.version = 11 : i64} {
  func.func @conv_relu_stats_kernel(%arg0: i32, %arg1: i32, %arg2: memref<1x16x256xf32, #tpu.memory_space<vmem>>, %arg3: memref<4x16xf32, #tpu.memory_space<vmem>>, %arg4: memref<1x4x256xf32, #tpu.memory_space<vmem>>, %arg5: memref<1x4x1xf32, #tpu.memory_space<vmem>>, %arg6: memref<1x4x1xf32, #tpu.memory_space<vmem>>) attributes {dimension_semantics = [#tpu.dimension_semantics<parallel>, #tpu.dimension_semantics<arbitrary>], iteration_bounds = array<i64: 2, 1>, scalar_prefetch = 0 : i64, scratch_operands = 0 : i64, tpu.core_type = #tpu.core_type<tc>, window_params = [{transform_indices = @transform_0, window_bounds = array<i64: 1, 16, 256>}, {pipeline_mode = #tpu.pipeline_mode<synchronous>, transform_indices = @transform_1, window_bounds = array<i64: 4, 16>}, {transform_indices = @transform_2, window_bounds = array<i64: 1, 4, 256>}, {transform_indices = @transform_3, window_bounds = array<i64: 1, 4, 1>}, {transform_indices = @transform_4, window_bounds = array<i64: 1, 4, 1>}]} {
    %c0 = arith.constant 0 : index
    %c0_0 = arith.constant 0 : index
    %0 = vector.load %arg3[%c0, %c0_0] : memref<4x16xf32, #tpu.memory_space<vmem>>, vector<4x16xf32>
    %c0_1 = arith.constant 0 : index
    %c0_2 = arith.constant 0 : index
    %c0_3 = arith.constant 0 : index
    %1 = vector.load %arg2[%c0_1, %c0_2, %c0_3] : memref<1x16x256xf32, #tpu.memory_space<vmem>>, vector<1x16x256xf32>
    %2 = vector.shape_cast %1 : vector<1x16x256xf32> to vector<16x256xf32>
    %cst = arith.constant dense<0.000000e+00> : vector<4x256xf32>
    %3 = tpu.matmul %0, %2, %cst {dimension_numbers = #tpu.dot_dimension_numbers<[1], [0], [0], [1], [0, 0, 1, 1], [], []>} : vector<4x16xf32>, vector<16x256xf32>, vector<4x256xf32> -> vector<4x256xf32>
    %cst_4 = arith.constant 0.000000e+00 : f32
    %4 = vector.broadcast %cst_4 : f32 to vector<4x256xf32>
    %5 = arith.maximumf %3, %4 : vector<4x256xf32>
    %c0_5 = arith.constant 0 : index
    %c0_6 = arith.constant 0 : index
    %c0_7 = arith.constant 0 : index
    %6 = vector.load %arg4[%c0_5, %c0_6, %c0_7] : memref<1x4x256xf32, #tpu.memory_space<vmem>>, vector<1x4x256xf32>
    %7 = vector.shape_cast %6 : vector<1x4x256xf32> to vector<4x256xf32>
    %8 = vector.shape_cast %5 : vector<4x256xf32> to vector<1x4x256xf32>
    tpu.vector_store %arg4[%c0_5, %c0_6, %c0_7], %8 {strides = array<i32>} : memref<1x4x256xf32, #tpu.memory_space<vmem>>, vector<1x4x256xf32>,
    %c0_i32 = arith.constant 0 : i32
    %9 = arith.cmpi eq, %arg1, %c0_i32 : i32
    %10 = arith.extui %9 : i1 to i32
    %c0_i32_8 = arith.constant 0 : i32
    %11 = arith.cmpi ne, %10, %c0_i32_8 : i32
    scf.if %11 {
      %cst_23 = arith.constant 0.000000e+00 : f32
      %29 = vector.broadcast %cst_23 : f32 to vector<4x1xf32>
      %c0_24 = arith.constant 0 : index
      %c0_25 = arith.constant 0 : index
      %c0_26 = arith.constant 0 : index
      %30 = vector.load %arg5[%c0_24, %c0_25, %c0_26] : memref<1x4x1xf32, #tpu.memory_space<vmem>>, vector<1x4x1xf32>
      %31 = vector.shape_cast %30 : vector<1x4x1xf32> to vector<4x1xf32>
      %32 = vector.shape_cast %29 : vector<4x1xf32> to vector<1x4x1xf32>
      tpu.vector_store %arg5[%c0_24, %c0_25, %c0_26], %32 {strides = array<i32>} : memref<1x4x1xf32, #tpu.memory_space<vmem>>, vector<1x4x1xf32>,
      %cst_27 = arith.constant 0.000000e+00 : f32
      %33 = vector.broadcast %cst_27 : f32 to vector<4x1xf32>
      %c0_28 = arith.constant 0 : index
      %c0_29 = arith.constant 0 : index
      %c0_30 = arith.constant 0 : index
      %34 = vector.load %arg6[%c0_28, %c0_29, %c0_30] : memref<1x4x1xf32, #tpu.memory_space<vmem>>, vector<1x4x1xf32>
      %35 = vector.shape_cast %34 : vector<1x4x1xf32> to vector<4x1xf32>
      %36 = vector.shape_cast %33 : vector<4x1xf32> to vector<1x4x1xf32>
      tpu.vector_store %arg6[%c0_28, %c0_29, %c0_30], %36 {strides = array<i32>} : memref<1x4x1xf32, #tpu.memory_space<vmem>>, vector<1x4x1xf32>,
    } else {
    }
    %c0_9 = arith.constant 0 : index
    %c0_10 = arith.constant 0 : index
    %c0_11 = arith.constant 0 : index
    %12 = vector.load %arg5[%c0_9, %c0_10, %c0_11] : memref<1x4x1xf32, #tpu.memory_space<vmem>>, vector<1x4x1xf32>
    %13 = vector.shape_cast %12 : vector<1x4x1xf32> to vector<4x1xf32>
    %cst_12 = arith.constant dense<0.000000e+00> : vector<4xf32>
    %14 = vector.multi_reduction <add>, %5, %cst_12 [1] : vector<4x256xf32> to vector<4xf32>
    %15 = vector.shape_cast %14 : vector<4xf32> to vector<4x1xf32>
    %16 = arith.addf %13, %15 : vector<4x1xf32>
    %c0_13 = arith.constant 0 : index
    %c0_14 = arith.constant 0 : index
    %c0_15 = arith.constant 0 : index
    %17 = vector.load %arg5[%c0_13, %c0_14, %c0_15] : memref<1x4x1xf32, #tpu.memory_space<vmem>>, vector<1x4x1xf32>
    %18 = vector.shape_cast %17 : vector<1x4x1xf32> to vector<4x1xf32>
    %19 = vector.shape_cast %16 : vector<4x1xf32> to vector<1x4x1xf32>
    tpu.vector_store %arg5[%c0_13, %c0_14, %c0_15], %19 {strides = array<i32>} : memref<1x4x1xf32, #tpu.memory_space<vmem>>, vector<1x4x1xf32>,
    %c0_16 = arith.constant 0 : index
    %c0_17 = arith.constant 0 : index
    %c0_18 = arith.constant 0 : index
    %20 = vector.load %arg6[%c0_16, %c0_17, %c0_18] : memref<1x4x1xf32, #tpu.memory_space<vmem>>, vector<1x4x1xf32>
    %21 = vector.shape_cast %20 : vector<1x4x1xf32> to vector<4x1xf32>
    %22 = arith.mulf %5, %5 : vector<4x256xf32>
    %cst_19 = arith.constant dense<0.000000e+00> : vector<4xf32>
    %23 = vector.multi_reduction <add>, %22, %cst_19 [1] : vector<4x256xf32> to vector<4xf32>
    %24 = vector.shape_cast %23 : vector<4xf32> to vector<4x1xf32>
    %25 = arith.addf %21, %24 : vector<4x1xf32>
    %c0_20 = arith.constant 0 : index
    %c0_21 = arith.constant 0 : index
    %c0_22 = arith.constant 0 : index
    %26 = vector.load %arg6[%c0_20, %c0_21, %c0_22] : memref<1x4x1xf32, #tpu.memory_space<vmem>>, vector<1x4x1xf32>
    %27 = vector.shape_cast %26 : vector<1x4x1xf32> to vector<4x1xf32>
    %28 = vector.shape_cast %25 : vector<4x1xf32> to vector<1x4x1xf32>
    tpu.vector_store %arg6[%c0_20, %c0_21, %c0_22], %28 {strides = array<i32>} : memref<1x4x1xf32, #tpu.memory_space<vmem>>, vector<1x4x1xf32>,
    return
  }
  func.func @transform_0(%arg0: i32, %arg1: i32) -> (i32, i32, i32) {
    %c0_i32 = arith.constant 0 : i32
    %c0_i32_0 = arith.constant 0 : i32
    return %arg0, %c0_i32, %arg1 : i32, i32, i32
  }
  func.func @transform_1(%arg0: i32, %arg1: i32) -> (i32, i32) {
    %c0_i32 = arith.constant 0 : i32
    %c0_i32_0 = arith.constant 0 : i32
    %c0_i32_1 = arith.constant 0 : i32
    return %c0_i32, %c0_i32_0 : i32, i32
  }
  func.func @transform_2(%arg0: i32, %arg1: i32) -> (i32, i32, i32) {
    %c0_i32 = arith.constant 0 : i32
    %c0_i32_0 = arith.constant 0 : i32
    return %arg0, %c0_i32, %arg1 : i32, i32, i32
  }
  func.func @transform_3(%arg0: i32, %arg1: i32) -> (i32, i32, i32) {
    %c0_i32 = arith.constant 0 : i32
    %c0_i32_0 = arith.constant 0 : i32
    %c0_i32_1 = arith.constant 0 : i32
    return %arg0, %c0_i32, %c0_i32_0 : i32, i32, i32
  }
  func.func @transform_4(%arg0: i32, %arg1: i32) -> (i32, i32, i32) {
    %c0_i32 = arith.constant 0 : i32
    %c0_i32_0 = arith.constant 0 : i32
    %c0_i32_1 = arith.constant 0 : i32
    return %arg0, %c0_i32, %c0_i32_0 : i32, i32, i32
  }
}

module attributes {stable_mosaic.version = 11 : i64} {
  func.func @bn_apply_kernel(%arg0: i32, %arg1: i32, %arg2: memref<1x4x256xf32, #tpu.memory_space<vmem>>, %arg3: memref<4x1xf32, #tpu.memory_space<vmem>>, %arg4: memref<4x1xf32, #tpu.memory_space<vmem>>, %arg5: memref<1x4x256xf32, #tpu.memory_space<vmem>>) attributes {dimension_semantics = [#tpu.dimension_semantics<parallel>, #tpu.dimension_semantics<parallel>], iteration_bounds = array<i64: 2, 1>, scalar_prefetch = 0 : i64, scratch_operands = 0 : i64, tpu.core_type = #tpu.core_type<tc>, window_params = [{transform_indices = @transform_0, window_bounds = array<i64: 1, 4, 256>}, {pipeline_mode = #tpu.pipeline_mode<synchronous>, transform_indices = @transform_1, window_bounds = array<i64: 4, 1>}, {pipeline_mode = #tpu.pipeline_mode<synchronous>, transform_indices = @transform_2, window_bounds = array<i64: 4, 1>}, {transform_indices = @transform_3, window_bounds = array<i64: 1, 4, 256>}]} {
    %c0 = arith.constant 0 : index
    %c0_0 = arith.constant 0 : index
    %c0_1 = arith.constant 0 : index
    %0 = vector.load %arg2[%c0, %c0_0, %c0_1] : memref<1x4x256xf32, #tpu.memory_space<vmem>>, vector<1x4x256xf32>
    %1 = vector.shape_cast %0 : vector<1x4x256xf32> to vector<4x256xf32>
    %c0_2 = arith.constant 0 : index
    %c0_3 = arith.constant 0 : index
    %2 = vector.load %arg3[%c0_2, %c0_3] : memref<4x1xf32, #tpu.memory_space<vmem>>, vector<4x1xf32>
    %3 = vector.broadcast %2 : vector<4x1xf32> to vector<4x256xf32>
    %4 = arith.mulf %1, %3 : vector<4x256xf32>
    %c0_4 = arith.constant 0 : index
    %c0_5 = arith.constant 0 : index
    %5 = vector.load %arg4[%c0_4, %c0_5] : memref<4x1xf32, #tpu.memory_space<vmem>>, vector<4x1xf32>
    %6 = vector.broadcast %5 : vector<4x1xf32> to vector<4x256xf32>
    %7 = arith.addf %4, %6 : vector<4x256xf32>
    %c0_6 = arith.constant 0 : index
    %c0_7 = arith.constant 0 : index
    %c0_8 = arith.constant 0 : index
    %8 = vector.load %arg5[%c0_6, %c0_7, %c0_8] : memref<1x4x256xf32, #tpu.memory_space<vmem>>, vector<1x4x256xf32>
    %9 = vector.shape_cast %8 : vector<1x4x256xf32> to vector<4x256xf32>
    %10 = vector.shape_cast %7 : vector<4x256xf32> to vector<1x4x256xf32>
    tpu.vector_store %arg5[%c0_6, %c0_7, %c0_8], %10 {strides = array<i32>} : memref<1x4x256xf32, #tpu.memory_space<vmem>>, vector<1x4x256xf32>,
    return
  }
  func.func @transform_0(%arg0: i32, %arg1: i32) -> (i32, i32, i32) {
    %c0_i32 = arith.constant 0 : i32
    %c0_i32_0 = arith.constant 0 : i32
    return %arg0, %c0_i32, %arg1 : i32, i32, i32
  }
  func.func @transform_1(%arg0: i32, %arg1: i32) -> (i32, i32) {
    %c0_i32 = arith.constant 0 : i32
    %c0_i32_0 = arith.constant 0 : i32
    %c0_i32_1 = arith.constant 0 : i32
    return %c0_i32, %c0_i32_0 : i32, i32
  }
  func.func @transform_2(%arg0: i32, %arg1: i32) -> (i32, i32) {
    %c0_i32 = arith.constant 0 : i32
    %c0_i32_0 = arith.constant 0 : i32
    %c0_i32_1 = arith.constant 0 : i32
    return %c0_i32, %c0_i32_0 : i32, i32
  }
  func.func @transform_3(%arg0: i32, %arg1: i32) -> (i32, i32, i32) {
    %c0_i32 = arith.constant 0 : i32
    %c0_i32_0 = arith.constant 0 : i32
    return %arg0, %c0_i32, %arg1 : i32, i32, i32
  }
}

</mosaic_0001>

<bundles_post_ra>
// kernel: conv_module_forward.3
= control target key start
LH: loop header
LB: loop body
LE: loop exit
PB: predicated region body
PF: predicated region fallthrough
CT: control target
= control target key end

     0   :  { %s407_s12 = smov 0   ;;  %s409_s13 = smov 0   ;;  %s443_s0 = inlined_call_operand.vmem [shape: f32[2,4,256], index: 0, kind: input, shape index: {}]   ;;  %s444_s1 = inlined_call_operand.vmem [shape: f32[4,1], index: 1, kind: input, shape index: {}]   ;;  %s445_s2 = inlined_call_operand.vmem [shape: f32[4,1], index: 2, kind: input, shape index: {}]   ;;  %s446_s3 = inlined_call_operand.vmem [shape: f32[2,4,256], index: 3, kind: output, shape index: {}]  }
   0x1   :  { %s411_s14 = smov 0  }
   0x2 LB: > { %s25_s15 = sadd.s32 1, %s379_s13  ;;  %p325_p0 = scmp.ge.s32.totalorder %s383_s14, 1  ;;  %s383_s14 = sphi %s411_s14, %s13_s14   ;;  %s379_s13 = sphi %s409_s13, %s448_s13   ;;  %s375_s12 = sphi %s407_s12, %s447_s12  }
   0x3   : > { %p27_p1 = scmp.ge.s32.totalorder %s25_s15, 2  ;;  %p158_p2 = scmp.lt.s32.totalorder %s383_s14, 3 }
   0x5   : > { %s450_s15 = smov (%p27_p1, %s25_s15), 0  ;;  %p159_p3 = pnand %p325_p0, %p158_p2 }
   0x6   : > { %p191_p4 = scmp.lt.s32.totalorder (!%p159_p3), %s375_s12, 1 }
   0x7   : > { %162 = sbr.rel (%p159_p3) target bundleno = 142 (0x8e), region = 32 }
   0xc   : > { %v211_v0 = vld [vmem:[%s444_s1] sm:$0xf]  ;;  %v385_v1 = vmov 0   ;;  %s452_s12 = smov (!%p191_p4, %s375_s12), 1  ;;  %v386_v3 = vmov 839922192  }
   0xd   : > { %360 = vset.pattern.permute.xlu0 %v385_v1  ;;  %v222_v2 = vld [vmem:[%s445_s2] sm:$0xf]  ;;  %v217_v4 = vunpack.c.l.s4 %v386_v3  ;;  %s332_s20 = sshll.u32 %s452_s12, 3 }
   0xe   : > { %214 = vperm.xlu0 %360, %v211_v0   ;;  %s198_s23 = scalar_lea.vmem %s443_s0, %s332_s20  ;;  %s208_s26 = scalar_lea.vmem %s446_s3, %s332_s20 }
   0xf   : > { %v218_v6 = vunpack.c.0.s8 %v217_v4  ;;  %v210_v8 = vld [vmem:[%s198_s23] sm:$0xff] }
  0x16   : > { %225 = vperm.xlu0 %360, %v222_v2  }
  0x80   : > { %v215_v5 = vpop.permute.xlu0 %214 }
  0x81   : > { %v219_v7 = vperm.slane %v215_v5, %v218_v6 }
  0x83   : > { %v221_v10 = vmul.f32 %v219_v7, %v210_v8 }
  0x88   : > { %v226_v9 = vpop.permute.xlu0 %225 }
  0x89   : > { %v230_v11 = vperm.slane %v226_v9, %v218_v6 }
  0x8b   : > { %v232_v12 = vadd.f32 %v230_v11, %v221_v10 }
  0x8d   : > { %233 = vst [vmem:[%s208_s26] sm:$0xff] %v232_v12 }
  0x8e PF: > { %s13_s14 = sadd.s32 1, %s383_s14   ;;  %s447_s12 = smov %s379_s13 }
  0x8f   : > { %p10_p5 = scmp.ge.s32.totalorder %s13_s14, 4   ;;  %s448_s13 = smov %s450_s15 }
  0x91   :  { %12 = sbr.rel (!%p10_p5) target bundleno = 2 (0x2), region = 62 }

// kernel: conv_module_forward.2
= control target key start
LH: loop header
LB: loop body
LE: loop exit
PB: predicated region body
PF: predicated region fallthrough
CT: control target
= control target key end

     0   :  { %s583_s15 = smov 0   ;;  %s585_s16 = smov 0   ;;  %s634_s0 = inlined_call_operand.vmem [shape: f32[2,16,256], index: 0, kind: input, shape index: {}]   ;;  %s635_s1 = inlined_call_operand.vmem [shape: f32[4,16], index: 1, kind: input, shape index: {}]   ;;  %s636_s2 = inlined_call_operand.vmem [shape: f32[2,4,256], index: 2, kind: output, shape index: {0}]   ;;  %s637_s3 = inlined_call_operand.vmem [shape: f32[2,4,1], index: 3, kind: output, shape index: {1}]   ;;  %s638_s4 = inlined_call_operand.vmem [shape: f32[2,4,1], index: 4, kind: output, shape index: {2}]  }
   0x1   :  { %s587_s17 = smov 0  }
   0x2 LB: > { %s27_s18 = sadd.s32 1, %s551_s16  ;;  %p495_p0 = scmp.ge.s32.totalorder %s555_s17, 1  ;;  %s555_s17 = sphi %s587_s17, %s15_s17   ;;  %s551_s16 = sphi %s585_s16, %s640_s16   ;;  %s547_s15 = sphi %s583_s15, %s639_s15  }
   0x3   : > { %p29_p1 = scmp.ge.s32.totalorder %s27_s18, 2  ;;  %p188_p2 = scmp.lt.s32.totalorder %s555_s17, 3 }
   0x5   : > { %s642_s18 = smov (%p29_p1, %s27_s18), 0  ;;  %p189_p3 = pnand %p495_p0, %p188_p2 }
   0x6   : > { %p231_p4 = scmp.lt.s32.totalorder (!%p189_p3), %s547_s15, 1 }
   0x7   : > { %192 = sbr.rel (%p189_p3) target bundleno = 277 (0x115), region = 28 }
   0xc   : > { %s644_s15 = smov (!%p231_p4, %s547_s15), 1  ;;  %v258_v4 = vld [vmem:[%s635_s1] sm:$0xf]  ;;  %vm263_vm0 = vcmask 130048   ;;  %vm320_vm1 = vcmask 3072   ;;  %v557_v5 = vmov 0.0  }
   0xd   : > { %s506_s19 = sshll.u32 %s644_s15, 5  ;;  %s500_s25 = sshll.u32 %s644_s15, 2  ;;  %vm312_vm2 = vcmask 1043456  }
   0xe   : > { %s238_s22 = scalar_lea.vmem %s634_s0, %s506_s19  ;;  %s253_s28 = scalar_lea.vmem %s637_s3, %s500_s25 }
   0xf   : > { %v261_v0 = vld [vmem:[%s238_s22 + $0x10] sm:$0xff]  ;;  %v262_v1 = vld [vmem:[%s238_s22 + $0x18] sm:$0xff]  ;;  %v259_v2 = vld [vmem:[%s238_s22] sm:$0xff]  ;;  %321 = vst.msk [vmem:[%s253_s28] sm:$0xf] %vm320_vm1, %v557_v5  ;;  %s257_s5 = scalar_lea.vmem %s638_s4, %s500_s25  ;;  %s507_s6 = sshll.u32 %s644_s15, 3 }
  0x10   : > { %281 = vmatpush.msra.mxu0 %v261_v0  ;;  %301 = vmatpush.msra.mxu1 %v262_v1  ;;  %v260_v3 = vld [vmem:[%s238_s22 + $0x8] sm:$0xff]  ;;  %322 = vst.msk [vmem:[%s257_s5] sm:$0xf] %vm320_vm1, %v557_v5  ;;  %s248_s9 = scalar_lea.vmem %s636_s2, %s507_s6 }
  0x12   : > { %282 = vmatpush.msra.mxu0 %v259_v2  ;;  %302 = vmatpush.msra.mxu1 %v260_v3 }
  0x13   : > { %502 = vmatmul.msk.f32.vlgmr.msra.gmra.mxu0 %vm263_vm0, %v258_v4  ;;  %503 = vmatmul.msk.f32.vlgmr.msra.gmra.mxu1 %vm263_vm0, %v258_v4 }
  0x16   : > { %v323_v20 = vld [vmem:[%s253_s28] sm:$0xf] }
  0x17   : > { %v332_v23 = vld [vmem:[%s257_s5] sm:$0xf] }
  0x90   : > { %v284_v6 = vpop.f32.mrf.mxu0  ;;  %v304_v7 = vpop.f32.mrf.mxu1 }
  0x91   : > { %v307_v8 = vmax.f32 %v284_v6, 0.0  ;;  %v308_v9 = vmax.f32 %v304_v7, 0.0 }
  0x93   : > { %v311_v10 = vrot.slane %v308_v9, 4  ;;  %v324_v11 = vsel %vm312_vm2, %v307_v8, 0.0  ;;  %v325_v12 = vsel %vm312_vm2, %v308_v9, 0.0  ;;  %v333_v15 = vmul.f32 %v307_v8, %v307_v8 }
  0x94   : > { %v326_v13 = vadd.f32 %v325_v12, %v324_v11  ;;  %v334_v16 = vmul.f32 %v308_v9, %v308_v9 }
  0x95   : > { %v313_v14 = vsel %vm312_vm2, %v307_v8, %v311_v10  ;;  %v335_v17 = vsel %vm312_vm2, %v333_v15, 0.0 }
  0x96   : > { %315 = vst [vmem:[%s248_s9] sm:$0xff] %v313_v14  ;;  %327 = vadd.xlane.f32.xlu0 %v326_v13  ;;  %v336_v18 = vsel %vm312_vm2, %v334_v16, 0.0 }
  0x97   : > { %v337_v19 = vadd.f32 %v336_v18, %v335_v17 }
  0x9e   : > { %338 = vadd.xlane.f32.xlu0 %v337_v19 }
 0x109   : > { %v328_v21 = vpop.xlane.xlu0 %327 }
 0x10a   : > { %v329_v22 = vadd.f32 %v328_v21, %v323_v20 }
 0x10c   : > { %331 = vst.msk [vmem:[%s253_s28] sm:$0xf] %vm320_vm1, %v329_v22 }
 0x111   : > { %v339_v24 = vpop.xlane.xlu0 %338 }
 0x112   : > { %v340_v25 = vadd.f32 %v339_v24, %v332_v23 }
 0x114   : > { %341 = vst.msk [vmem:[%s257_s5] sm:$0xf] %vm320_vm1, %v340_v25 }
 0x115 PF: > { %s15_s17 = sadd.s32 1, %s555_s17   ;;  %s639_s15 = smov %s551_s16 }
 0x116   : > { %p12_p5 = scmp.ge.s32.totalorder %s15_s17, 4   ;;  %s640_s16 = smov %s642_s18 }
 0x118   :  { %14 = sbr.rel (!%p12_p5) target bundleno = 2 (0x2), region = 86 }

</bundles_post_ra>
